<compile_context>
chip_gen: v7x
topology: tpu7x:2x2x1
jax: 0.10.0
libtpu: 0.0.40
codegen_flags: <defaults>
</compile_context>

<pallas_src>
import math
from functools import partial

import jax
import jax.numpy as jnp
from jax import lax
from jax.experimental import pallas as pl
from jax.experimental.pallas import tpu as pltpu


def _mhsa_kernel(xq_ref, xk_ref, xv_ref, mask_ref,
                 wq_ref, bq_ref, wk_ref, bk_ref, wv_ref, bv_ref,
                 wo_ref, bo_ref, out_ref, ctx_ref, *, n_heads, dph):
    """One grid step == one batch element."""
    xq = xq_ref[0]                               # (S, D) bf16
    xk = xk_ref[0]
    xv = xv_ref[0]

    # Full-width QKV projections (one wide, deep MXU matmul per input).
    # 1/sqrt(dim_per_head) is already folded into wq / bq host-side.
    q = jnp.dot(xq, wq_ref[...], preferred_element_type=jnp.float32) + bq_ref[...]
    k = jnp.dot(xk, wk_ref[...], preferred_element_type=jnp.float32) + bk_ref[...]
    v = jnp.dot(xv, wv_ref[...], preferred_element_type=jnp.float32) + bv_ref[...]

    q_b = q.astype(jnp.bfloat16)
    k_b = k.astype(jnp.bfloat16)
    v_b = v.astype(jnp.bfloat16)

    # key mask: True where the original mask == 0 (positions to block).
    key_blocked = mask_ref[0] == 0.0             # (1, S) broadcasts over query rows

    # Per-head attention.  Head h owns output columns [h*dph, (h+1)*dph) of the
    # head-major Q/K/V (natural nn.Linear column layout) -> static lane slices.
    for h in range(n_heads):
        sl = slice(h * dph, (h + 1) * dph)
        qh = q_b[:, sl]                          # (S, dph)
        kh = k_b[:, sl]
        vh = v_b[:, sl]

        # scores = qh @ kh^T without an explicit transpose (contract last dims).
        scores = lax.dot_general(
            qh, kh, dimension_numbers=(((1,), (1,)), ((), ())),
            preferred_element_type=jnp.float32)  # (S, S) f32
        scores = jnp.where(key_blocked, jnp.float32(-1e30), scores)

        # Numerically stable softmax over the key axis, kept in f32.
        scores = scores - jnp.max(scores, axis=-1, keepdims=True)
        e = jnp.exp(scores)
        w = e / jnp.sum(e, axis=-1, keepdims=True)
        # TODO(synk): nn.Dropout(p=0.2) is identity in eval mode; head_mask /
        # output_attentions (defaults None / False) are not implemented.

        ctx_ref[:, sl] = jnp.dot(w.astype(jnp.bfloat16), vh,
                                 preferred_element_type=jnp.float32)  # (S, dph)

    # Single deep (K = n_heads*dph = D) output projection: the cross-head sum
    # lives inside the MXU contraction; no per-head f32 accumulator RMW and a
    # single lane-dense (S, D) output store.
    ctx = ctx_ref[...].astype(jnp.bfloat16)      # (S, D), head-major columns
    out = jnp.dot(ctx, wo_ref[...], preferred_element_type=jnp.float32) + bo_ref[...]
    out_ref[0] = out.astype(out_ref.dtype)


def distill_mhsa_pallas(query, key, value, mask, params, *, n_heads):
    """query/key/value: (B, S, D) f32, mask: (B, S) (nonzero == attend)."""
    B, S, D = query.shape
    dph = D // n_heads
    scale = 1.0 / math.sqrt(dph)

    # Weights are stored (in, out) with head-major output columns (the natural
    # nn.Linear layout), so no per-head repacking is needed; fold the query
    # scale into wq / bq and cast weights to bf16 for the MXU.
    wq = (params["wq"] * scale).astype(jnp.bfloat16)
    wk = params["wk"].astype(jnp.bfloat16)
    wv = params["wv"].astype(jnp.bfloat16)
    wo = params["wo"].astype(jnp.bfloat16)

    bq = (params["bq"] * scale).astype(jnp.float32)      # (1, D)
    bk = params["bk"].astype(jnp.float32)
    bv = params["bv"].astype(jnp.float32)
    bo = params["bo"].astype(jnp.float32)

    # TODO(synk): when query is key is value (true self-attention) a single
    # shared activation input would cut the HBM->VMEM activation DMA 3x.
    q_b = query.astype(jnp.bfloat16)
    k_b = key.astype(jnp.bfloat16)
    v_b = value.astype(jnp.bfloat16)
    mask3 = mask.reshape(B, 1, S).astype(jnp.float32)

    act_spec = pl.BlockSpec((1, S, D), lambda b: (b, 0, 0))
    mask_spec = pl.BlockSpec((1, 1, S), lambda b: (b, 0, 0))
    w_spec = pl.BlockSpec((D, D), lambda b: (0, 0))
    b_spec = pl.BlockSpec((1, D), lambda b: (0, 0))

    kernel = partial(_mhsa_kernel, n_heads=n_heads, dph=dph)

    return pl.pallas_call(
        kernel,
        out_shape=jax.ShapeDtypeStruct((B, S, D), query.dtype),
        grid_spec=pltpu.PrefetchScalarGridSpec(
            num_scalar_prefetch=0,
            grid=(B,),
            in_specs=[act_spec, act_spec, act_spec, mask_spec,
                      w_spec, b_spec, w_spec, b_spec,
                      w_spec, b_spec, w_spec, b_spec],
            out_specs=act_spec,
            scratch_shapes=[pltpu.VMEM((S, D), jnp.float32)],
        ),
        compiler_params=pltpu.CompilerParams(
            dimension_semantics=("parallel",)),
    )(q_b, k_b, v_b, mask3, wq, bq, wk, bk, wv, bv, wo, bo)


def distill_mhsa_reference(query, key, value, mask, params, *, n_heads):
    """Pure-JAX f32 reference matching the PyTorch forward (eval mode)."""
    B, S, D = query.shape
    dph = D // n_heads

    def lin(x, w, b):
        return x @ w + b                    # w already (in, out)

    def shape(x):
        return x.reshape(B, S, n_heads, dph).transpose(0, 2, 1, 3)

    q = shape(lin(query, params["wq"], params["bq"])) / math.sqrt(dph)
    k = shape(lin(key, params["wk"], params["bk"]))
    v = shape(lin(value, params["wv"], params["bv"]))

    scores = jnp.einsum("bhqd,bhkd->bhqk", q, k)
    key_masked = (mask == 0.0).reshape(B, 1, 1, S)
    scores = jnp.where(key_masked, jnp.finfo(scores.dtype).min, scores)
    weights = jax.nn.softmax(scores, axis=-1)
    ctx = jnp.einsum("bhqk,bhkd->bhqd", weights, v)
    ctx = ctx.transpose(0, 2, 1, 3).reshape(B, S, D)
    return lin(ctx, params["wo"], params["bo"])


def init_params(key, dim):
    ks = jax.random.split(key, 8)
    scale = 1.0 / math.sqrt(dim)

    def w(k):
        return jax.random.normal(k, (dim, dim), jnp.float32) * scale

    def b(k):
        return jax.random.normal(k, (1, dim), jnp.float32) * 0.01

    return {
        "wq": w(ks[0]), "bq": b(ks[1]),
        "wk": w(ks[2]), "bk": b(ks[3]),
        "wv": w(ks[4]), "bv": b(ks[5]),
        "wo": w(ks[6]), "bo": b(ks[7]),
    }


if __name__ == "__main__":
    B, S, D, H = 2, 8, 32, 4

    root = jax.random.PRNGKey(0)
    k_p, k_q, k_k, k_v = jax.random.split(root, 4)

    params = init_params(k_p, D)
    query = jax.random.normal(k_q, (B, S, D), jnp.float32)
    key_in = jax.random.normal(k_k, (B, S, D), jnp.float32)
    value = jax.random.normal(k_v, (B, S, D), jnp.float32)

    # attention mask (B, S): 1.0 = attend, 0.0 = blocked
    mask = jnp.ones((B, S), jnp.float32)
    mask = mask.at[1, 6:].set(0.0)

    out = distill_mhsa_pallas(query, key_in, value, mask, params, n_heads=H)
    out = jax.block_until_ready(out)

    ref = distill_mhsa_reference(query, key_in, value, mask, params, n_heads=H)
    assert out.shape == (B, S, D)
    # bf16 matmul operands -> relaxed tolerance vs the f32 reference.
    assert jnp.allclose(out, ref, rtol=5e-2, atol=5e-2), "mismatch vs reference"

    print("KERNEL_OK")
</pallas_src>

<mosaic_0001>
module attributes {stable_mosaic.version = 11 : i64} {
  func.func @_mhsa_kernel(%arg0: i32, %arg1: memref<1x8x32xbf16, #tpu.memory_space<vmem>>, %arg2: memref<1x8x32xbf16, #tpu.memory_space<vmem>>, %arg3: memref<1x8x32xbf16, #tpu.memory_space<vmem>>, %arg4: memref<1x1x8xf32, #tpu.memory_space<vmem>>, %arg5: memref<32x32xbf16, #tpu.memory_space<vmem>>, %arg6: memref<1x32xf32, #tpu.memory_space<vmem>>, %arg7: memref<32x32xbf16, #tpu.memory_space<vmem>>, %arg8: memref<1x32xf32, #tpu.memory_space<vmem>>, %arg9: memref<32x32xbf16, #tpu.memory_space<vmem>>, %arg10: memref<1x32xf32, #tpu.memory_space<vmem>>, %arg11: memref<32x32xbf16, #tpu.memory_space<vmem>>, %arg12: memref<1x32xf32, #tpu.memory_space<vmem>>, %arg13: memref<1x8x32xf32, #tpu.memory_space<vmem>>, %arg14: memref<8x32xf32, #tpu.memory_space<vmem>>) attributes {dimension_semantics = [#tpu.dimension_semantics<parallel>], iteration_bounds = array<i64: 2>, scalar_prefetch = 0 : i64, scratch_operands = 1 : i64, tpu.core_type = #tpu.core_type<tc>, window_params = [{transform_indices = @transform_0, window_bounds = array<i64: 1, 8, 32>}, {transform_indices = @transform_1, window_bounds = array<i64: 1, 8, 32>}, {transform_indices = @transform_2, window_bounds = array<i64: 1, 8, 32>}, {transform_indices = @transform_3, window_bounds = array<i64: 1, 1, 8>}, {pipeline_mode = #tpu.pipeline_mode<synchronous>, transform_indices = @transform_4, window_bounds = array<i64: 32, 32>}, {pipeline_mode = #tpu.pipeline_mode<synchronous>, transform_indices = @transform_5, window_bounds = array<i64: 1, 32>}, {pipeline_mode = #tpu.pipeline_mode<synchronous>, transform_indices = @transform_6, window_bounds = array<i64: 32, 32>}, {pipeline_mode = #tpu.pipeline_mode<synchronous>, transform_indices = @transform_7, window_bounds = array<i64: 1, 32>}, {pipeline_mode = #tpu.pipeline_mode<synchronous>, transform_indices = @transform_8, window_bounds = array<i64: 32, 32>}, {pipeline_mode = #tpu.pipeline_mode<synchronous>, transform_indices = @transform_9, window_bounds = array<i64: 1, 32>}, {pipeline_mode = #tpu.pipeline_mode<synchronous>, transform_indices = @transform_10, window_bounds = array<i64: 32, 32>}, {pipeline_mode = #tpu.pipeline_mode<synchronous>, transform_indices = @transform_11, window_bounds = array<i64: 1, 32>}, {transform_indices = @transform_12, window_bounds = array<i64: 1, 8, 32>}]} {
    %c0 = arith.constant 0 : index
    %c0_0 = arith.constant 0 : index
    %c0_1 = arith.constant 0 : index
    %0 = vector.load %arg1[%c0, %c0_0, %c0_1] : memref<1x8x32xbf16, #tpu.memory_space<vmem>>, vector<1x8x32xbf16>
    %1 = vector.shape_cast %0 : vector<1x8x32xbf16> to vector<8x32xbf16>
    %c0_2 = arith.constant 0 : index
    %c0_3 = arith.constant 0 : index
    %c0_4 = arith.constant 0 : index
    %2 = vector.load %arg2[%c0_2, %c0_3, %c0_4] : memref<1x8x32xbf16, #tpu.memory_space<vmem>>, vector<1x8x32xbf16>
    %3 = vector.shape_cast %2 : vector<1x8x32xbf16> to vector<8x32xbf16>
    %c0_5 = arith.constant 0 : index
    %c0_6 = arith.constant 0 : index
    %c0_7 = arith.constant 0 : index
    %4 = vector.load %arg3[%c0_5, %c0_6, %c0_7] : memref<1x8x32xbf16, #tpu.memory_space<vmem>>, vector<1x8x32xbf16>
    %5 = vector.shape_cast %4 : vector<1x8x32xbf16> to vector<8x32xbf16>
    %c0_8 = arith.constant 0 : index
    %c0_9 = arith.constant 0 : index
    %6 = vector.load %arg5[%c0_8, %c0_9] : memref<32x32xbf16, #tpu.memory_space<vmem>>, vector<32x32xbf16>
    %cst = arith.constant dense<0.000000e+00> : vector<8x32xf32>
    %7 = tpu.matmul %1, %6, %cst {dimension_numbers = #tpu.dot_dimension_numbers<[1], [0], [0], [1], [0, 0, 1, 1], [], []>} : vector<8x32xbf16>, vector<32x32xbf16>, vector<8x32xf32> -> vector<8x32xf32>
    %c0_10 = arith.constant 0 : index
    %c0_11 = arith.constant 0 : index
    %8 = vector.load %arg6[%c0_10, %c0_11] : memref<1x32xf32, #tpu.memory_space<vmem>>, vector<1x32xf32>
    %9 = vector.broadcast %8 : vector<1x32xf32> to vector<8x32xf32>
    %10 = arith.addf %7, %9 : vector<8x32xf32>
    %c0_12 = arith.constant 0 : index
    %c0_13 = arith.constant 0 : index
    %11 = vector.load %arg7[%c0_12, %c0_13] : memref<32x32xbf16, #tpu.memory_space<vmem>>, vector<32x32xbf16>
    %cst_14 = arith.constant dense<0.000000e+00> : vector<8x32xf32>
    %12 = tpu.matmul %3, %11, %cst_14 {dimension_numbers = #tpu.dot_dimension_numbers<[1], [0], [0], [1], [0, 0, 1, 1], [], []>} : vector<8x32xbf16>, vector<32x32xbf16>, vector<8x32xf32> -> vector<8x32xf32>
    %c0_15 = arith.constant 0 : index
    %c0_16 = arith.constant 0 : index
    %13 = vector.load %arg8[%c0_15, %c0_16] : memref<1x32xf32, #tpu.memory_space<vmem>>, vector<1x32xf32>
    %14 = vector.broadcast %13 : vector<1x32xf32> to vector<8x32xf32>
    %15 = arith.addf %12, %14 : vector<8x32xf32>
    %c0_17 = arith.constant 0 : index
    %c0_18 = arith.constant 0 : index
    %16 = vector.load %arg9[%c0_17, %c0_18] : memref<32x32xbf16, #tpu.memory_space<vmem>>, vector<32x32xbf16>
    %cst_19 = arith.constant dense<0.000000e+00> : vector<8x32xf32>
    %17 = tpu.matmul %5, %16, %cst_19 {dimension_numbers = #tpu.dot_dimension_numbers<[1], [0], [0], [1], [0, 0, 1, 1], [], []>} : vector<8x32xbf16>, vector<32x32xbf16>, vector<8x32xf32> -> vector<8x32xf32>
    %c0_20 = arith.constant 0 : index
    %c0_21 = arith.constant 0 : index
    %18 = vector.load %arg10[%c0_20, %c0_21] : memref<1x32xf32, #tpu.memory_space<vmem>>, vector<1x32xf32>
    %19 = vector.broadcast %18 : vector<1x32xf32> to vector<8x32xf32>
    %20 = arith.addf %17, %19 : vector<8x32xf32>
    %21 = arith.truncf %10 : vector<8x32xf32> to vector<8x32xbf16>
    %22 = arith.truncf %15 : vector<8x32xf32> to vector<8x32xbf16>
    %23 = arith.truncf %20 : vector<8x32xf32> to vector<8x32xbf16>
    %c0_22 = arith.constant 0 : index
    %c0_23 = arith.constant 0 : index
    %c0_24 = arith.constant 0 : index
    %24 = vector.load %arg4[%c0_22, %c0_23, %c0_24] : memref<1x1x8xf32, #tpu.memory_space<vmem>>, vector<1x1x8xf32>
    %25 = vector.shape_cast %24 : vector<1x1x8xf32> to vector<1x8xf32>
    %cst_25 = arith.constant 0.000000e+00 : f32
    %26 = vector.broadcast %cst_25 : f32 to vector<1x8xf32>
    %27 = arith.cmpf oeq, %25, %26 : vector<1x8xf32>
    %28 = vector.extract_strided_slice %21 {offsets = [0, 0], sizes = [8, 8], strides = [1, 1]} : vector<8x32xbf16> to vector<8x8xbf16>
    %29 = vector.extract_strided_slice %22 {offsets = [0, 0], sizes = [8, 8], strides = [1, 1]} : vector<8x32xbf16> to vector<8x8xbf16>
    %30 = vector.extract_strided_slice %23 {offsets = [0, 0], sizes = [8, 8], strides = [1, 1]} : vector<8x32xbf16> to vector<8x8xbf16>
    %cst_26 = arith.constant dense<0.000000e+00> : vector<8x8xf32>
    %31 = tpu.matmul %28, %29, %cst_26 {dimension_numbers = #tpu.dot_dimension_numbers<[1], [1], [0], [0], [0, 0, 1, 0], [], []>} : vector<8x8xbf16>, vector<8x8xbf16>, vector<8x8xf32> -> vector<8x8xf32>
    %cst_27 = arith.constant -1.000000e+30 : f32
    %32 = vector.shape_cast %27 : vector<1x8xi1> to vector<1x8xi1>
    %33 = vector.broadcast %32 : vector<1x8xi1> to vector<8x8xi1>
    %34 = vector.broadcast %cst_27 : f32 to vector<8x8xf32>
    %35 = arith.select %33, %34, %31 : vector<8x8xi1>, vector<8x8xf32>
    %cst_28 = arith.constant dense<0xFF800000> : vector<8xf32>
    %36 = vector.multi_reduction <maximumf>, %35, %cst_28 [1] : vector<8x8xf32> to vector<8xf32>
    %37 = vector.shape_cast %36 : vector<8xf32> to vector<8x1xf32>
    %38 = vector.broadcast %37 : vector<8x1xf32> to vector<8x8xf32>
    %39 = arith.subf %35, %38 : vector<8x8xf32>
    %40 = math.exp %39 : vector<8x8xf32>
    %cst_29 = arith.constant dense<0.000000e+00> : vector<8xf32>
    %41 = vector.multi_reduction <add>, %40, %cst_29 [1] : vector<8x8xf32> to vector<8xf32>
    %42 = vector.shape_cast %41 : vector<8xf32> to vector<8x1xf32>
    %43 = vector.broadcast %42 : vector<8x1xf32> to vector<8x8xf32>
    %44 = arith.divf %40, %43 : vector<8x8xf32>
    %45 = arith.truncf %44 : vector<8x8xf32> to vector<8x8xbf16>
    %cst_30 = arith.constant dense<0.000000e+00> : vector<8x8xf32>
    %46 = tpu.matmul %45, %30, %cst_30 {dimension_numbers = #tpu.dot_dimension_numbers<[1], [0], [0], [1], [0, 0, 1, 1], [], []>} : vector<8x8xbf16>, vector<8x8xbf16>, vector<8x8xf32> -> vector<8x8xf32>
    %c0_31 = arith.constant 0 : index
    %c0_32 = arith.constant 0 : index
    %47 = vector.load %arg14[%c0_31, %c0_32] : memref<8x32xf32, #tpu.memory_space<vmem>>, vector<8x8xf32>
    tpu.vector_store %arg14[%c0_31, %c0_32], %46 {strides = array<i32>} : memref<8x32xf32, #tpu.memory_space<vmem>>, vector<8x8xf32>,
    %48 = vector.extract_strided_slice %21 {offsets = [0, 8], sizes = [8, 8], strides = [1, 1]} : vector<8x32xbf16> to vector<8x8xbf16>
    %49 = vector.extract_strided_slice %22 {offsets = [0, 8], sizes = [8, 8], strides = [1, 1]} : vector<8x32xbf16> to vector<8x8xbf16>
    %50 = vector.extract_strided_slice %23 {offsets = [0, 8], sizes = [8, 8], strides = [1, 1]} : vector<8x32xbf16> to vector<8x8xbf16>
    %cst_33 = arith.constant dense<0.000000e+00> : vector<8x8xf32>
    %51 = tpu.matmul %48, %49, %cst_33 {dimension_numbers = #tpu.dot_dimension_numbers<[1], [1], [0], [0], [0, 0, 1, 0], [], []>} : vector<8x8xbf16>, vector<8x8xbf16>, vector<8x8xf32> -> vector<8x8xf32>
    %cst_34 = arith.constant -1.000000e+30 : f32
    %52 = vector.shape_cast %27 : vector<1x8xi1> to vector<1x8xi1>
    %53 = vector.broadcast %52 : vector<1x8xi1> to vector<8x8xi1>
    %54 = vector.broadcast %cst_34 : f32 to vector<8x8xf32>
    %55 = arith.select %53, %54, %51 : vector<8x8xi1>, vector<8x8xf32>
    %cst_35 = arith.constant dense<0xFF800000> : vector<8xf32>
    %56 = vector.multi_reduction <maximumf>, %55, %cst_35 [1] : vector<8x8xf32> to vector<8xf32>
    %57 = vector.shape_cast %56 : vector<8xf32> to vector<8x1xf32>
    %58 = vector.broadcast %57 : vector<8x1xf32> to vector<8x8xf32>
    %59 = arith.subf %55, %58 : vector<8x8xf32>
    %60 = math.exp %59 : vector<8x8xf32>
    %cst_36 = arith.constant dense<0.000000e+00> : vector<8xf32>
    %61 = vector.multi_reduction <add>, %60, %cst_36 [1] : vector<8x8xf32> to vector<8xf32>
    %62 = vector.shape_cast %61 : vector<8xf32> to vector<8x1xf32>
    %63 = vector.broadcast %62 : vector<8x1xf32> to vector<8x8xf32>
    %64 = arith.divf %60, %63 : vector<8x8xf32>
    %65 = arith.truncf %64 : vector<8x8xf32> to vector<8x8xbf16>
    %cst_37 = arith.constant dense<0.000000e+00> : vector<8x8xf32>
    %66 = tpu.matmul %65, %50, %cst_37 {dimension_numbers = #tpu.dot_dimension_numbers<[1], [0], [0], [1], [0, 0, 1, 1], [], []>} : vector<8x8xbf16>, vector<8x8xbf16>, vector<8x8xf32> -> vector<8x8xf32>
    %c0_38 = arith.constant 0 : index
    %c8 = arith.constant 8 : index
    %67 = vector.load %arg14[%c0_38, %c8] : memref<8x32xf32, #tpu.memory_space<vmem>>, vector<8x8xf32>
    tpu.vector_store %arg14[%c0_38, %c8], %66 {strides = array<i32>} : memref<8x32xf32, #tpu.memory_space<vmem>>, vector<8x8xf32>,
    %68 = vector.extract_strided_slice %21 {offsets = [0, 16], sizes = [8, 8], strides = [1, 1]} : vector<8x32xbf16> to vector<8x8xbf16>
    %69 = vector.extract_strided_slice %22 {offsets = [0, 16], sizes = [8, 8], strides = [1, 1]} : vector<8x32xbf16> to vector<8x8xbf16>
    %70 = vector.extract_strided_slice %23 {offsets = [0, 16], sizes = [8, 8], strides = [1, 1]} : vector<8x32xbf16> to vector<8x8xbf16>
    %cst_39 = arith.constant dense<0.000000e+00> : vector<8x8xf32>
    %71 = tpu.matmul %68, %69, %cst_39 {dimension_numbers = #tpu.dot_dimension_numbers<[1], [1], [0], [0], [0, 0, 1, 0], [], []>} : vector<8x8xbf16>, vector<8x8xbf16>, vector<8x8xf32> -> vector<8x8xf32>
    %cst_40 = arith.constant -1.000000e+30 : f32
    %72 = vector.shape_cast %27 : vector<1x8xi1> to vector<1x8xi1>
    %73 = vector.broadcast %72 : vector<1x8xi1> to vector<8x8xi1>
    %74 = vector.broadcast %cst_40 : f32 to vector<8x8xf32>
    %75 = arith.select %73, %74, %71 : vector<8x8xi1>, vector<8x8xf32>
    %cst_41 = arith.constant dense<0xFF800000> : vector<8xf32>
    %76 = vector.multi_reduction <maximumf>, %75, %cst_41 [1] : vector<8x8xf32> to vector<8xf32>
    %77 = vector.shape_cast %76 : vector<8xf32> to vector<8x1xf32>
    %78 = vector.broadcast %77 : vector<8x1xf32> to vector<8x8xf32>
    %79 = arith.subf %75, %78 : vector<8x8xf32>
    %80 = math.exp %79 : vector<8x8xf32>
    %cst_42 = arith.constant dense<0.000000e+00> : vector<8xf32>
    %81 = vector.multi_reduction <add>, %80, %cst_42 [1] : vector<8x8xf32> to vector<8xf32>
    %82 = vector.shape_cast %81 : vector<8xf32> to vector<8x1xf32>
    %83 = vector.broadcast %82 : vector<8x1xf32> to vector<8x8xf32>
    %84 = arith.divf %80, %83 : vector<8x8xf32>
    %85 = arith.truncf %84 : vector<8x8xf32> to vector<8x8xbf16>
    %cst_43 = arith.constant dense<0.000000e+00> : vector<8x8xf32>
    %86 = tpu.matmul %85, %70, %cst_43 {dimension_numbers = #tpu.dot_dimension_numbers<[1], [0], [0], [1], [0, 0, 1, 1], [], []>} : vector<8x8xbf16>, vector<8x8xbf16>, vector<8x8xf32> -> vector<8x8xf32>
    %c0_44 = arith.constant 0 : index
    %c16 = arith.constant 16 : index
    %87 = vector.load %arg14[%c0_44, %c16] : memref<8x32xf32, #tpu.memory_space<vmem>>, vector<8x8xf32>
    tpu.vector_store %arg14[%c0_44, %c16], %86 {strides = array<i32>} : memref<8x32xf32, #tpu.memory_space<vmem>>, vector<8x8xf32>,
    %88 = vector.extract_strided_slice %21 {offsets = [0, 24], sizes = [8, 8], strides = [1, 1]} : vector<8x32xbf16> to vector<8x8xbf16>
    %89 = vector.extract_strided_slice %22 {offsets = [0, 24], sizes = [8, 8], strides = [1, 1]} : vector<8x32xbf16> to vector<8x8xbf16>
    %90 = vector.extract_strided_slice %23 {offsets = [0, 24], sizes = [8, 8], strides = [1, 1]} : vector<8x32xbf16> to vector<8x8xbf16>
    %cst_45 = arith.constant dense<0.000000e+00> : vector<8x8xf32>
    %91 = tpu.matmul %88, %89, %cst_45 {dimension_numbers = #tpu.dot_dimension_numbers<[1], [1], [0], [0], [0, 0, 1, 0], [], []>} : vector<8x8xbf16>, vector<8x8xbf16>, vector<8x8xf32> -> vector<8x8xf32>
    %cst_46 = arith.constant -1.000000e+30 : f32
    %92 = vector.shape_cast %27 : vector<1x8xi1> to vector<1x8xi1>
    %93 = vector.broadcast %92 : vector<1x8xi1> to vector<8x8xi1>
    %94 = vector.broadcast %cst_46 : f32 to vector<8x8xf32>
    %95 = arith.select %93, %94, %91 : vector<8x8xi1>, vector<8x8xf32>
    %cst_47 = arith.constant dense<0xFF800000> : vector<8xf32>
    %96 = vector.multi_reduction <maximumf>, %95, %cst_47 [1] : vector<8x8xf32> to vector<8xf32>
    %97 = vector.shape_cast %96 : vector<8xf32> to vector<8x1xf32>
    %98 = vector.broadcast %97 : vector<8x1xf32> to vector<8x8xf32>
    %99 = arith.subf %95, %98 : vector<8x8xf32>
    %100 = math.exp %99 : vector<8x8xf32>
    %cst_48 = arith.constant dense<0.000000e+00> : vector<8xf32>
    %101 = vector.multi_reduction <add>, %100, %cst_48 [1] : vector<8x8xf32> to vector<8xf32>
    %102 = vector.shape_cast %101 : vector<8xf32> to vector<8x1xf32>
    %103 = vector.broadcast %102 : vector<8x1xf32> to vector<8x8xf32>
    %104 = arith.divf %100, %103 : vector<8x8xf32>
    %105 = arith.truncf %104 : vector<8x8xf32> to vector<8x8xbf16>
    %cst_49 = arith.constant dense<0.000000e+00> : vector<8x8xf32>
    %106 = tpu.matmul %105, %90, %cst_49 {dimension_numbers = #tpu.dot_dimension_numbers<[1], [0], [0], [1], [0, 0, 1, 1], [], []>} : vector<8x8xbf16>, vector<8x8xbf16>, vector<8x8xf32> -> vector<8x8xf32>
    %c0_50 = arith.constant 0 : index
    %c24 = arith.constant 24 : index
    %107 = vector.load %arg14[%c0_50, %c24] : memref<8x32xf32, #tpu.memory_space<vmem>>, vector<8x8xf32>
    tpu.vector_store %arg14[%c0_50, %c24], %106 {strides = array<i32>} : memref<8x32xf32, #tpu.memory_space<vmem>>, vector<8x8xf32>,
    %c0_51 = arith.constant 0 : index
    %c0_52 = arith.constant 0 : index
    %108 = vector.load %arg14[%c0_51, %c0_52] : memref<8x32xf32, #tpu.memory_space<vmem>>, vector<8x32xf32>
    %109 = arith.truncf %108 : vector<8x32xf32> to vector<8x32xbf16>
    %c0_53 = arith.constant 0 : index
    %c0_54 = arith.constant 0 : index
    %110 = vector.load %arg11[%c0_53, %c0_54] : memref<32x32xbf16, #tpu.memory_space<vmem>>, vector<32x32xbf16>
    %cst_55 = arith.constant dense<0.000000e+00> : vector<8x32xf32>
    %111 = tpu.matmul %109, %110, %cst_55 {dimension_numbers = #tpu.dot_dimension_numbers<[1], [0], [0], [1], [0, 0, 1, 1], [], []>} : vector<8x32xbf16>, vector<32x32xbf16>, vector<8x32xf32> -> vector<8x32xf32>
    %c0_56 = arith.constant 0 : index
    %c0_57 = arith.constant 0 : index
    %112 = vector.load %arg12[%c0_56, %c0_57] : memref<1x32xf32, #tpu.memory_space<vmem>>, vector<1x32xf32>
    %113 = vector.broadcast %112 : vector<1x32xf32> to vector<8x32xf32>
    %114 = arith.addf %111, %113 : vector<8x32xf32>
    %c0_58 = arith.constant 0 : index
    %c0_59 = arith.constant 0 : index
    %c0_60 = arith.constant 0 : index
    %115 = vector.load %arg13[%c0_58, %c0_59, %c0_60] : memref<1x8x32xf32, #tpu.memory_space<vmem>>, vector<1x8x32xf32>
    %116 = vector.shape_cast %115 : vector<1x8x32xf32> to vector<8x32xf32>
    %117 = vector.shape_cast %114 : vector<8x32xf32> to vector<1x8x32xf32>
    tpu.vector_store %arg13[%c0_58, %c0_59, %c0_60], %117 {strides = array<i32>} : memref<1x8x32xf32, #tpu.memory_space<vmem>>, vector<1x8x32xf32>,
    return
  }
  func.func @transform_0(%arg0: i32) -> (i32, i32, i32) {
    %c0_i32 = arith.constant 0 : i32
    %c0_i32_0 = arith.constant 0 : i32
    %c0_i32_1 = arith.constant 0 : i32
    return %arg0, %c0_i32, %c0_i32_0 : i32, i32, i32
  }
  func.func @transform_1(%arg0: i32) -> (i32, i32, i32) {
    %c0_i32 = arith.constant 0 : i32
    %c0_i32_0 = arith.constant 0 : i32
    %c0_i32_1 = arith.constant 0 : i32
    return %arg0, %c0_i32, %c0_i32_0 : i32, i32, i32
  }
  func.func @transform_2(%arg0: i32) -> (i32, i32, i32) {
    %c0_i32 = arith.constant 0 : i32
    %c0_i32_0 = arith.constant 0 : i32
    %c0_i32_1 = arith.constant 0 : i32
    return %arg0, %c0_i32, %c0_i32_0 : i32, i32, i32
  }
  func.func @transform_3(%arg0: i32) -> (i32, i32, i32) {
    %c0_i32 = arith.constant 0 : i32
    %c0_i32_0 = arith.constant 0 : i32
    %c0_i32_1 = arith.constant 0 : i32
    return %arg0, %c0_i32, %c0_i32_0 : i32, i32, i32
  }
  func.func @transform_4(%arg0: i32) -> (i32, i32) {
    %c0_i32 = arith.constant 0 : i32
    %c0_i32_0 = arith.constant 0 : i32
    %c0_i32_1 = arith.constant 0 : i32
    return %c0_i32, %c0_i32_0 : i32, i32
  }
  func.func @transform_5(%arg0: i32) -> (i32, i32) {
    %c0_i32 = arith.constant 0 : i32
    %c0_i32_0 = arith.constant 0 : i32
    %c0_i32_1 = arith.constant 0 : i32
    return %c0_i32, %c0_i32_0 : i32, i32
  }
  func.func @transform_6(%arg0: i32) -> (i32, i32) {
    %c0_i32 = arith.constant 0 : i32
    %c0_i32_0 = arith.constant 0 : i32
    %c0_i32_1 = arith.constant 0 : i32
    return %c0_i32, %c0_i32_0 : i32, i32
  }
  func.func @transform_7(%arg0: i32) -> (i32, i32) {
    %c0_i32 = arith.constant 0 : i32
    %c0_i32_0 = arith.constant 0 : i32
    %c0_i32_1 = arith.constant 0 : i32
    return %c0_i32, %c0_i32_0 : i32, i32
  }
  func.func @transform_8(%arg0: i32) -> (i32, i32) {
    %c0_i32 = arith.constant 0 : i32
    %c0_i32_0 = arith.constant 0 : i32
    %c0_i32_1 = arith.constant 0 : i32
    return %c0_i32, %c0_i32_0 : i32, i32
  }
  func.func @transform_9(%arg0: i32) -> (i32, i32) {
    %c0_i32 = arith.constant 0 : i32
    %c0_i32_0 = arith.constant 0 : i32
    %c0_i32_1 = arith.constant 0 : i32
    return %c0_i32, %c0_i32_0 : i32, i32
  }
  func.func @transform_10(%arg0: i32) -> (i32, i32) {
    %c0_i32 = arith.constant 0 : i32
    %c0_i32_0 = arith.constant 0 : i32
    %c0_i32_1 = arith.constant 0 : i32
    return %c0_i32, %c0_i32_0 : i32, i32
  }
  func.func @transform_11(%arg0: i32) -> (i32, i32) {
    %c0_i32 = arith.constant 0 : i32
    %c0_i32_0 = arith.constant 0 : i32
    %c0_i32_1 = arith.constant 0 : i32
    return %c0_i32, %c0_i32_0 : i32, i32
  }
  func.func @transform_12(%arg0: i32) -> (i32, i32, i32) {
    %c0_i32 = arith.constant 0 : i32
    %c0_i32_0 = arith.constant 0 : i32
    %c0_i32_1 = arith.constant 0 : i32
    return %arg0, %c0_i32, %c0_i32_0 : i32, i32, i32
  }
}

</mosaic_0001>

<bundles_post_ra>
// kernel: tpu_custom_call.1
= control target key start
LH: loop header
LB: loop body
LE: loop exit
PB: predicated region body
PF: predicated region fallthrough
CT: control target
= control target key end

     0   :  { %s2699_s0 = inlined_call_operand.hbm [shape: bf16[2,8,32], index: 0, kind: input, shape index: {}]   ;;  %s2700_s1 = inlined_call_operand.hbm [shape: bf16[2,8,32], index: 1, kind: input, shape index: {}]   ;;  %s2701_s2 = inlined_call_operand.hbm [shape: bf16[2,8,32], index: 2, kind: input, shape index: {}]   ;;  %s2702_s3 = inlined_call_operand.vmem [shape: f32[2,1,8], index: 3, kind: input, shape index: {}]   ;;  %s2703_s4 = inlined_call_operand.hbm [shape: bf16[32,32], index: 4, kind: input, shape index: {}]   ;;  %s2704_s5 = inlined_call_operand.hbm [shape: f32[1,32], index: 5, kind: input, shape index: {}]   ;;  %s2705_s6 = inlined_call_operand.vmem [shape: bf16[32,32], index: 6, kind: input, shape index: {}]   ;;  %s2706_s7 = inlined_call_operand.hbm [shape: f32[1,32], index: 7, kind: input, shape index: {}]   ;;  %s2707_s8 = inlined_call_operand.hbm [shape: bf16[32,32], index: 8, kind: input, shape index: {}]   ;;  %s2708_s9 = inlined_call_operand.hbm [shape: f32[1,32], index: 9, kind: input, shape index: {}]   ;;  %s2709_s10 = inlined_call_operand.vmem [shape: bf16[32,32], index: 10, kind: input, shape index: {}]   ;;  %s2710_s11 = inlined_call_operand.vmem [shape: f32[1,32], index: 11, kind: input, shape index: {}]   ;;  %s2711_s12 = inlined_call_operand.hbm [shape: f32[2,8,32], index: 12, kind: output, shape index: {}]  }
   0x1   :  { %2736 = sst [smem:[#allocation30_spill]] %s2700_s1 }
   0x2   :  { %2737 = sst [smem:[#allocation31_spill]] %s2702_s3 }
   0x3   :  { %2738 = sst [smem:[#allocation32_spill]] %s2703_s4 }
   0x4   :  { %2739 = sst [smem:[#allocation33_spill]] %s2706_s7 }
   0x5   :  { %2740 = sst [smem:[#allocation34_spill]] %s2709_s10 }
   0x6   :  { %2741 = sst [smem:[#allocation35_spill]] %s2710_s11 }
   0x7   :  { %2742 = sst [smem:[#allocation36_spill]] %s2711_s12 }
   0x8   :  { %17 = vsyncpa [#allocation4], 0 }
   0x9   :  { %19 = vsyncpa [#allocation4 + $0x1], 0 }
   0xa   :  { %20 = vsyncpa [#allocation7], 0 }
   0xb   :  { %22 = vsyncpa [#allocation7 + $0x1], 0 }
   0xc   :  { %23 = vsyncpa [#allocation10], 0 }
   0xd   :  { %24 = vsyncpa [#allocation13], 0 }
   0xe   :  { %25 = vsyncpa [#allocation16], 0 }
   0xf   :  { %26 = vsyncpa [#allocation5], 0 }
  0x10   :  { %28 = vsyncpa [#allocation5 + $0x1], 0  ;;  %s2211_s21 = smov 0   ;;  %s2213_s22 = smov 0  }
  0x11   :  { %s2215_s23 = smov 0   ;;  %s2217_s24 = smov 0  }
  0x12 LB: > { %2743 = sst [smem:[#allocation24_spill]] %s2112_s21  ;;  %s2126_s25 = smov [#allocation9]   ;;  %s2124_s24 = sphi %s2217_s24, %s2787_s24   ;;  %s2120_s23 = sphi %s2215_s23, %s2791_s23   ;;  %s2116_s22 = sphi %s2213_s22, %s2790_s22   ;;  %s2112_s21 = sphi %s2211_s21, %s2789_s21  }
  0x13   : > { %2744 = sst [smem:[#allocation25_spill]] %s2124_s24  ;;  %s349_s26 = sshll.u32 %s2126_s25, 4  ;;  %s2237_s26 = int_to_ptr.vmem [resolvable:$true] %s349_s26 }
  0x14   : > { %s2232_s27 = sadd.s32 4294967295, %s2124_s24   ;;  %p1511_p0 = scmp.ge.s32.totalorder %s2124_s24, 1 }
  0x15   : > { %p2723_p1 = scmp.eq.s32.totalorder %s2232_s27, 0  ;;  %p337_p2 = scmp.lt.s32.totalorder %s2124_s24, 3 }
  0x16   : > { %s2127_s29 = smov [#allocation12]   ;;  %s2747_s4 = sld [smem:[#allocation32_spill]] }
  0x17   : > { %p2239_p3 = pnand %p1511_p0, %p337_p2  ;;  %s377_s30 = sshll.u32 %s2127_s29, 4  ;;  %s2252_s30 = int_to_ptr.vmem [resolvable:$true] %s377_s30 }
  0x19   : > { %s2745_s28 = scalar_select %p2239_p3, 1, 0 }
  0x1a   : > { %p1698_p5 = pneg %p2239_p3 }
  0x1c   : > { %p2248_p6 = pnand %p1698_p5, %p2723_p1  ;;  %s1812_s16 = scalar_lea.hbm %s2747_s4, 256 }
  0x1d   : > { %p1813_p7 = scmp.ne.s32.totalorder %s2747_s4, %s1812_s16  ;;  %p1819_p11 = scmp.lt.u32.totalorder %s1812_s16, %s2747_s4 }
  0x1e   : > { %s2746_s13 = scalar_select %p2248_p6, 1, 0 }
  0x1f   : > { %p2262_p8 = pneg %p2248_p6 }
  0x21   : > { %s2748_s19 = scalar_select %p2262_p8, 1, 0 }
  0x22   : > { %p1815_p9 = pnand %p2262_p8, %p1813_p7 }
  0x24   : > { %p1816_p10 = pneg %p1815_p9 }
  0x26   : > { %p1821_p12 = pnand %p1819_p11, %p1816_p10 }
  0x28   : > { %1824 = shalt.err (!%p1821_p12)
}
  0x29   : > { %s1825_s29 = scalar_lea.vmem %s2237_s26, 256  ;;  %p1833_p5 = scmp.lt.s32.totalorder %s2237_s26, %s2237_s26 }
  0x2a   : > { %p1826_p13 = scmp.ne.s32.totalorder %s2237_s26, %s1825_s29  ;;  %p1834_p4 = scmp.lt.s32.totalorder %s1825_s29, %s1825_s29 }
  0x2c   : > { %p1828_p0 = pnand %p1826_p13, %p2262_p8  ;;  %p1835_p7 = por %p1834_p4, %p1833_p5 }
  0x2e   : > { %p1829_p2 = pneg %p1828_p0 }
  0x30   : > { %p1836_p9 = pnand %p1835_p7, %p1829_p2 }
  0x32   : > { %1839 = shalt.err (!%p1836_p9)
}
  0x33   : > { %s2715_s14 = smov 64   ;;  %s2716_s15 = smov 4  }
  0x34   : > { %1701 = dma.hbm_to_vmem [thread:$0]  (!%p2248_p6), %s2747_s4, 256, %s2237_s26, [#allocation10], %s2715_s14, %s2715_s14, %s2716_s15  }
  0x35   : > { %s2749_s7 = sld [smem:[#allocation33_spill]] }
  0x3b   : > { %s1840_s25 = scalar_lea.hbm %s2749_s7, 16 }
  0x3c   : > { %p1841_p4 = scmp.ne.s32.totalorder %s2749_s7, %s1840_s25  ;;  %p1847_p12 = scmp.lt.u32.totalorder %s1840_s25, %s2749_s7 }
  0x3e   : > { %p1843_p10 = pnand %p1841_p4, %p2262_p8 }
  0x40   : > { %p1844_p11 = pneg %p1843_p10 }
  0x42   : > { %p1849_p13 = pnand %p1847_p12, %p1844_p11 }
  0x44   : > { %1852 = shalt.err (!%p1849_p13)
}
  0x45   : > { %s1853_s26 = scalar_lea.vmem %s2252_s30, 16  ;;  %s1860_s12 = scalar_lea.vmem %s2252_s30, 32 }
  0x46   : > { %p1854_p0 = scmp.ne.s32.totalorder %s2252_s30, %s1853_s26  ;;  %p1861_p7 = scmp.lt.s32.totalorder %s2252_s30, %s2252_s30 }
  0x47   : > { %p1862_p9 = scmp.lt.s32.totalorder %s1860_s12, %s1853_s26 }
  0x48   : > { %p1856_p2 = pnand %p1854_p0, %p2262_p8 }
  0x49   : > { %p1863_p4 = por %p1862_p9, %p1861_p7 }
  0x4a   : > { %p1857_p5 = pneg %p1856_p2 }
  0x4c   : > { %p1864_p10 = pnand %p1863_p4, %p1857_p5 }
  0x4e   : > { %1867 = shalt.err (!%p1864_p10)
}
  0x4f   : > { %1707 = dma.hbm_to_vmem [thread:$0]  (!%p2248_p6), %s2749_s7, 16, %s2252_s30, [#allocation13]  }
  0x50   : > { %s1510_s16 = sadd.s32 4294967294, %s2124_s24   ;;  %s2312_s17 = sadd.s32 1, %s2124_s24  }
  0x51   : > { %2750 = sst [smem:[#allocation26_spill]] %s2312_s17  ;;  %s38_s18 = ssub.s32 %s2124_s24, %s2312_s17 }
  0x52   : > { %s41_s20 = sadd.s32 1, %s2120_s23  ;;  %p39_p11 = scmp.eq.s32.totalorder %s38_s18, 0 }
  0x53   : > { %p48_p12 = scmp.ne.s32.totalorder %s2120_s23, %s2116_s22  ;;  %p49_p13 = scmp.eq.s32.totalorder %s2124_s24, 0 }
  0x54   : > { %p54_p0 = scmp.ne.s32.totalorder %s2116_s22, %s2112_s21  ;;  %p324_p7 = scmp.eq.s32.totalorder %s2232_s27, 1 }
  0x55   : > { %s2323_s25 = scalar_select %p39_p11, %s2120_s23, %s41_s20  }
  0x56   : > { %p50_p2 = por %p49_p13, %p48_p12  ;;  %p2327_p5 = por %p2723_p1, %p54_p0 }
  0x57   : > { %2751 = sst [smem:[#allocation27_spill]] %s2323_s25  ;;  %p330_p9 = scmp.eq.s32.totalorder %s1510_s16, 1 }
  0x58   : > { %s2752_s29 = scalar_select %p2327_p5, 1, 0 }
  0x59   : > { %p1733_p4 = scmp.lt.s32.totalorder %s2124_s24, 2  ;;  %s2717_s30 = sand.u32 1, %s2120_s23  }
  0x5a   : > { %p2334_p10 = por %p324_p7, %p48_p12  ;;  %p2338_p3 = por %p330_p9, %p54_p0 }
  0x5b   : > { %s2344_s10 = sshll.u32 %s2717_s30, 2  ;;  %s2347_s11 = sshll.u32 %s2124_s24, 6 }
  0x5c   : > { %s2753_s26 = scalar_select %p2334_p10, 1, 0 }
  0x5d   : > { %s2755_s12 = scalar_select %p2338_p3, 1, 0 }
  0x5e   : > { %2754 = sst [smem:[#allocation28_spill]] %s2753_s26  ;;  %p2349_p11 = pnand %p1733_p4, %p50_p2 }
  0x5f   : > { %2756 = sst [smem:[#allocation29_spill]] %s2755_s12  ;;  %s436_s16 = sand.u32 1, %s2124_s24  }
  0x60   : > { %s2757_s18 = scalar_select %p2349_p11, 1, 0 }
  0x61   : > { %s2758_s1 = sld [smem:[#allocation30_spill]]  ;;  %s440_s30 = scalar_lea.vmem [#allocation6], %s2344_s10 }
  0x62   : > { %s447_s4 = sshll.u32 %s440_s30, 4  ;;  %s2130_s7 = smov [#allocation11]   ;;  %s2361_s4 = int_to_ptr.vmem [resolvable:$true] %s447_s4 }
  0x63   : > { %s2363_s25 = sshll.u32 %s2130_s7, 4  ;;  %s2365_s17 = scalar_lea.sflag [#allocation7], %s436_s16  ;;  %s364_s25 = int_to_ptr.vmem [resolvable:$true] %s2363_s25 }
  0x64   : > { %p2371_p13 = pneg %p2349_p11 }
  0x66   : > { %s2759_s14 = scalar_select %p2371_p13, 1, 0 }
  0x67   : > { %s2358_s15 = scalar_lea.hbm %s2758_s1, %s2347_s11  ;;  %s1873_s24 = scalar_lea.hbm %s2758_s1, 128 }
  0x68   : > { %s1868_s12 = scalar_lea.hbm %s2358_s15, 64  ;;  %p1874_p7 = scmp.lt.u32.totalorder %s2358_s15, %s2758_s1 }
  0x69   : > { %p1869_p12 = scmp.ne.s32.totalorder %s2358_s15, %s1868_s12  ;;  %p1875_p9 = scmp.lt.u32.totalorder %s1873_s24, %s1868_s12 }
  0x6a   : > { %p1877_p1 = scmp.lt.u32.totalorder %s1868_s12, %s2358_s15 }
  0x6b   : > { %p1871_p0 = pnand %p2371_p13, %p1869_p12  ;;  %p1876_p4 = por %p1875_p9, %p1874_p7 }
  0x6d   : > { %p1872_p2 = pneg %p1871_p0  ;;  %p1878_p3 = por %p1877_p1, %p1876_p4 }
  0x6f   : > { %p1879_p10 = pnand %p1878_p3, %p1872_p2 }
  0x71   : > { %1882 = shalt.err (!%p1879_p10)
}
  0x72   : > { %s1883_s16 = scalar_lea.vmem %s2361_s4, 64  ;;  %s2131_s20 = smov [#allocation6]  }
  0x73   : > { %p1884_p12 = scmp.ne.s32.totalorder %s2361_s4, %s1883_s16  ;;  %s1888_s30 = sshll.u32 %s2131_s20, 4  ;;  %s1889_s30 = int_to_ptr.vmem [resolvable:$false] %s1888_s30 }
  0x74   : > { %s1890_s21 = scalar_lea.vmem %s1889_s30, 128  ;;  %p1891_p6 = scmp.lt.s32.totalorder %s2361_s4, %s1889_s30 }
  0x75   : > { %p1886_p0 = pnand %p1884_p12, %p2371_p13  ;;  %p1892_p8 = scmp.lt.s32.totalorder %s1890_s21, %s1883_s16 }
  0x77   : > { %p1887_p5 = pneg %p1886_p0  ;;  %p1893_p7 = por %p1892_p8, %p1891_p6 }
  0x79   : > { %p1894_p9 = pnand %p1893_p7, %p1887_p5 }
  0x7b   : > { %1897 = shalt.err (!%p1894_p9)
}
  0x7c   : > { %1720 = dma.hbm_to_vmem [thread:$0]  (!%p2349_p11), %s2358_s15, 64, %s2361_s4, %s2365_s17  }
  0x7d   : > { %s1898_s7 = scalar_lea.hbm %s2704_s5, 16  ;;  %p2760_p3 = scmp.ne.s32.totalorder %s2748_s19, 0 }
  0x7e   : > { %p1899_p1 = scmp.ne.s32.totalorder %s2704_s5, %s1898_s7  ;;  %p1905_p5 = scmp.lt.u32.totalorder %s1898_s7, %s2704_s5 }
  0x80   : > { %p1901_p6 = pnand %p1899_p1, %p2760_p3 }
  0x82   : > { %p1902_p8 = pneg %p1901_p6 }
  0x84   : > { %p1907_p10 = pnand %p1905_p5, %p1902_p8 }
  0x86   : > { %1910 = shalt.err (!%p1907_p10)
}
  0x87   : > { %s1911_s21 = scalar_lea.vmem %s364_s25, 16  ;;  %s1918_s4 = scalar_lea.vmem %s364_s25, 32 }
  0x88   : > { %p1912_p2 = scmp.ne.s32.totalorder %s364_s25, %s1911_s21  ;;  %p1919_p0 = scmp.lt.s32.totalorder %s364_s25, %s364_s25 }
  0x89   : > { %p1920_p7 = scmp.lt.s32.totalorder %s1918_s4, %s1911_s21 }
  0x8a   : > { %p1914_p4 = pnand %p1912_p2, %p2760_p3 }
  0x8b   : > { %p1921_p9 = por %p1920_p7, %p1919_p0 }
  0x8c   : > { %p1915_p12 = pneg %p1914_p4 }
  0x8e   : > { %p1922_p11 = pnand %p1921_p9, %p1915_p12 }
  0x90   : > { %1925 = shalt.err (!%p1922_p11)
}
  0x91   : > { %p2761_p1 = scmp.ne.s32.totalorder %s2746_s13, 0  ;;  %s2132_s24 = smov [#allocation14]  }
  0x92   : > { %s387_s12 = sshll.u32 %s2132_s24, 4  ;;  %s2133_s7 = smov [#allocation15]   ;;  %s388_s12 = int_to_ptr.vmem [resolvable:$true] %s387_s12 }
  0x93   : > { %1704 = dma.hbm_to_vmem [thread:$0]  (!%p2761_p1), %s2704_s5, 16, %s364_s25, [#allocation10]  }
  0x94   : > { %s401_s20 = sshll.u32 %s2133_s7, 4  ;;  %s1926_s26 = scalar_lea.hbm %s2707_s8, 256  ;;  %s402_s20 = int_to_ptr.vmem [resolvable:$true] %s401_s20 }
  0x95   : > { %p1927_p11 = scmp.ne.s32.totalorder %s2707_s8, %s1926_s26  ;;  %p1933_p5 = scmp.lt.u32.totalorder %s1926_s26, %s2707_s8 }
  0x97   : > { %p1929_p6 = pnand %p1927_p11, %p2760_p3 }
  0x99   : > { %p1930_p8 = pneg %p1929_p6 }
  0x9b   : > { %p1935_p10 = pnand %p1933_p5, %p1930_p8 }
  0x9d   : > { %1938 = shalt.err (!%p1935_p10)
}
  0x9e   : > { %s1939_s25 = scalar_lea.vmem %s388_s12, 256  ;;  %p1947_p0 = scmp.lt.s32.totalorder %s388_s12, %s388_s12 }
  0x9f   : > { %p1940_p2 = scmp.ne.s32.totalorder %s388_s12, %s1939_s25  ;;  %p1948_p7 = scmp.lt.s32.totalorder %s1939_s25, %s1939_s25 }
  0xa1   : > { %p1942_p4 = pnand %p1940_p2, %p2760_p3  ;;  %p1949_p9 = por %p1948_p7, %p1947_p0 }
  0xa3   : > { %p1943_p12 = pneg %p1942_p4 }
  0xa5   : > { %p1950_p13 = pnand %p1949_p9, %p1943_p12 }
  0xa7   : > { %1953 = shalt.err (!%p1950_p13)
}
  0xa8   : > { %s2762_s15 = smov 4   ;;  %s2763_s24 = smov 64  }
  0xa9   : > { %1710 = dma.hbm_to_vmem [thread:$0]  (!%p2761_p1), %s2707_s8, 256, %s388_s12, [#allocation13], %s2763_s24, %s2763_s24, %s2762_s15  }
  0xaa   : > { %s1954_s30 = scalar_lea.hbm %s2708_s9, 16 }
  0xab   : > { %p1955_p11 = scmp.ne.s32.totalorder %s2708_s9, %s1954_s30  ;;  %p1961_p8 = scmp.lt.u32.totalorder %s1954_s30, %s2708_s9 }
  0xad   : > { %p1957_p13 = pnand %p1955_p11, %p2760_p3 }
  0xaf   : > { %p1958_p6 = pneg %p1957_p13 }
  0xb1   : > { %p1963_p5 = pnand %p1961_p8, %p1958_p6 }
  0xb3   : > { %1966 = shalt.err (!%p1963_p5)
}
  0xb4   : > { %s1967_s3 = scalar_lea.vmem %s402_s20, 16  ;;  %s1974_s12 = scalar_lea.vmem %s402_s20, 32 }
  0xb5   : > { %p1968_p10 = scmp.ne.s32.totalorder %s402_s20, %s1967_s3  ;;  %p1975_p12 = scmp.lt.s32.totalorder %s402_s20, %s402_s20 }
  0xb6   : > { %p1976_p0 = scmp.lt.s32.totalorder %s1974_s12, %s1967_s3 }
  0xb7   : > { %p1970_p2 = pnand %p1968_p10, %p2760_p3 }
  0xb8   : > { %p1977_p7 = por %p1976_p0, %p1975_p12 }
  0xb9   : > { %p1971_p4 = pneg %p1970_p2 }
  0xbb   : > { %p1978_p9 = pnand %p1977_p7, %p1971_p4 }
  0xbd   : > { %1981 = shalt.err (!%p1978_p9)
}
  0xbe   : > { %1713 = dma.hbm_to_vmem [thread:$0]  (!%p2761_p1), %s2708_s9, 16, %s402_s20, [#allocation16]  }
  0xbf   : > { %s2457_s7 = scalar_lea.hbm %s2699_s0, %s2347_s11  ;;  %s422_s16 = scalar_lea.vmem [#allocation3], %s2344_s10 }
  0xc0   : > { %s429_s13 = sshll.u32 %s422_s16, 4  ;;  %s2466_s4 = scalar_lea.hbm %s2701_s2, %s2347_s11  ;;  %s2460_s13 = int_to_ptr.vmem [resolvable:$true] %s429_s13 }
  0xc1   : > { %s2764_s1 = sand.u32 1, %s2120_s23   ;;  %s1982_s25 = scalar_lea.hbm %s2457_s7, 64 }
  0xc2   : > { %s419_s20 = scalar_lea.sflag [#allocation4], %s2764_s1  ;;  %p1983_p3 = scmp.ne.s32.totalorder %s2457_s7, %s1982_s25 }
  0xc3   : > { %p2765_p1 = scmp.ne.s32.totalorder %s2759_s14, 0  ;;  %s1987_s15 = scalar_lea.hbm %s2699_s0, 128 }
  0xc4   : > { %p1988_p6 = scmp.lt.u32.totalorder %s2457_s7, %s2699_s0  ;;  %p1989_p8 = scmp.lt.u32.totalorder %s1987_s15, %s1982_s25 }
  0xc5   : > { %p1985_p11 = pnand %p1983_p3, %p2765_p1  ;;  %p1991_p10 = scmp.lt.u32.totalorder %s1982_s25, %s2457_s7 }
  0xc6   : > { %p1990_p5 = por %p1989_p8, %p1988_p6 }
  0xc7   : > { %p1986_p13 = pneg %p1985_p11 }
  0xc8   : > { %p1992_p2 = por %p1991_p10, %p1990_p5 }
  0xca   : > { %p1993_p4 = pnand %p1992_p2, %p1986_p13 }
  0xcc   : > { %1996 = shalt.err (!%p1993_p4)
}
  0xcd   : > { %s1997_s11 = scalar_lea.vmem %s2460_s13, 64  ;;  %s2134_s26 = smov [#allocation3]  }
  0xce   : > { %p1998_p12 = scmp.ne.s32.totalorder %s2460_s13, %s1997_s11  ;;  %s2002_s16 = sshll.u32 %s2134_s26, 4  ;;  %s2003_s16 = int_to_ptr.vmem [resolvable:$false] %s2002_s16 }
  0xcf   : > { %s2004_s30 = scalar_lea.vmem %s2003_s16, 128  ;;  %p2005_p9 = scmp.lt.s32.totalorder %s2460_s13, %s2003_s16 }
  0xd0   : > { %p2000_p0 = pnand %p1998_p12, %p2765_p1  ;;  %p2006_p3 = scmp.lt.s32.totalorder %s2004_s30, %s1997_s11 }
  0xd2   : > { %p2001_p7 = pneg %p2000_p0  ;;  %p2007_p11 = por %p2006_p3, %p2005_p9 }
  0xd4   : > { %p2008_p6 = pnand %p2007_p11, %p2001_p7 }
  0xd6   : > { %2011 = shalt.err (!%p2008_p6)
}
  0xd7   : > { %p2766_p13 = scmp.ne.s32.totalorder %s2757_s18, 0  ;;  %s458_s21 = scalar_lea.vmem [#allocation8], %s2344_s10 }
  0xd8   : > { %s465_s1 = sshll.u32 %s458_s21, 4  ;;  %s2012_s25 = scalar_lea.hbm %s2466_s4, 64  ;;  %s466_s1 = int_to_ptr.vmem [resolvable:$true] %s465_s1 }
  0xd9   : > { %1717 = dma.hbm_to_vmem [thread:$0]  (!%p2766_p13), %s2457_s7, 64, %s2460_s13, %s419_s20  }
  0xda   : > { %p2013_p8 = scmp.ne.s32.totalorder %s2466_s4, %s2012_s25  ;;  %s2017_s15 = scalar_lea.hbm %s2701_s2, 128 }
  0xdb   : > { %p2018_p2 = scmp.lt.u32.totalorder %s2466_s4, %s2701_s2  ;;  %p2019_p4 = scmp.lt.u32.totalorder %s2017_s15, %s2012_s25 }
  0xdc   : > { %p2015_p5 = pnand %p2013_p8, %p2765_p1  ;;  %p2021_p0 = scmp.lt.u32.totalorder %s2012_s25, %s2466_s4 }
  0xdd   : > { %p2020_p12 = por %p2019_p4, %p2018_p2 }
  0xde   : > { %p2016_p10 = pneg %p2015_p5 }
  0xdf   : > { %p2022_p7 = por %p2021_p0, %p2020_p12 }
  0xe1   : > { %p2023_p9 = pnand %p2022_p7, %p2016_p10 }
  0xe3   : > { %2026 = shalt.err (!%p2023_p9)
}
  0xe4   : > { %s2027_s10 = scalar_lea.vmem %s466_s1, 64  ;;  %s2135_s7 = smov [#allocation8]  }
  0xe5   : > { %p2028_p3 = scmp.ne.s32.totalorder %s466_s1, %s2027_s10  ;;  %s2032_s13 = sshll.u32 %s2135_s7, 4  ;;  %s2033_s13 = int_to_ptr.vmem [resolvable:$false] %s2032_s13 }
  0xe6   : > { %s2034_s20 = scalar_lea.vmem %s2033_s13, 128  ;;  %p2035_p8 = scmp.lt.s32.totalorder %s466_s1, %s2033_s13 }
  0xe7   : > { %p2030_p11 = pnand %p2028_p3, %p2765_p1  ;;  %p2036_p5 = scmp.lt.s32.totalorder %s2034_s20, %s2027_s10 }
  0xe9   : > { %p2031_p6 = pneg %p2030_p11  ;;  %p2037_p13 = por %p2036_p5, %p2035_p8 }
  0xeb   : > { %p2038_p2 = pnand %p2037_p13, %p2031_p6 }
  0xed   : > { %2041 = shalt.err (!%p2038_p2)
}
  0xee   : > { %p2767_p4 = scmp.ne.s32.totalorder %s2757_s18, 0  ;;  %p2768_p10 = scmp.ne.s32.totalorder %s2745_s28, 0 }
  0xef   : > { %s2513_s14 = sand.u32 (!%p2768_p10), 1, %s2116_s22   ;;  %p2769_p1 = scmp.ne.s32.totalorder (!%p2768_p10), %s2752_s29, 0 }
  0xf0   : > { %1723 = dma.hbm_to_vmem [thread:$0]  (!%p2767_p4), %s2466_s4, 64, %s466_s1, %s2365_s17  }
  0xf1   : > { %480 = sbr.rel (%p2768_p10) target bundleno = 1722 (0x6ba), region = 68  ;;  %s2516_s11 = sshll.u32 (!%p2768_p10), %s2513_s14, 2 }
  0xf2   : > { %s483_s26 = scalar_lea.sflag (!%p2768_p10), [#allocation4], %s2513_s14  ;;  %s486_s16 = scalar_lea.vmem (!%p2768_p10), [#allocation3], %s2516_s11 }
  0xf8   : > { %2087 = dma.done.wait (%p2769_p1), %s483_s26, 64  }
  0xf9   : > { %2089 = vsyncadd (%p2769_p1), %s483_s26, 4294967232  ;;  %s491_s28 = sand.u32 1, %s2232_s27   ;;  %s495_s18 = scalar_lea.vmem [#allocation6], %s2516_s11 }
  0xfa   : > { %s492_s17 = scalar_lea.sflag [#allocation7], %s491_s28 }
  0xfb   : > { %2091 = dma.done.wait (%p2769_p1), %s492_s17, 128  }
  0xfc   : > { %2093 = vsyncadd (%p2769_p1), %s492_s17, 4294967168  ;;  %s504_s4 = scalar_lea.vmem [#allocation8], %s2516_s11  ;;  %p2770_p13 = scmp.eq.s32.totalorder %s2232_s27, 0 }
  0xfe   : > { %2095 = dma.done.wait (%p2770_p13), [#allocation10], 272   ;;  %p2771_p12 = pmov %p2770_p13 }
 0x100   : > { %2097 = vsyncadd (%p2771_p12), [#allocation10], 4294967024  ;;  %p2772_p0 = pmov %p2771_p12 }
 0x102   : > { %2099 = dma.done.wait (%p2772_p0), [#allocation13], 272   ;;  %p2773_p7 = pmov %p2772_p0 }
 0x103   : > { %p2774_p9 = pmov %p2772_p0 }
 0x104   : > { %2101 = vsyncadd (%p2773_p7), [#allocation13], 4294967024 }
 0x105   : > { %2103 = dma.done.wait (%p2774_p9), [#allocation16], 16   ;;  %p2775_p3 = pmov %p2772_p0 }
 0x106   : > { %v2136_v0 = vmov 0.0   ;;  %vm2137_vm0 = vmmov 0   ;;  %v1788_v1 = vld [vmem:[%s2705_s6] sm:$0xff]   ;;  %v1790_v3 = vld [vmem:[%s2705_s6 + $0x8] sm:$0xff]   ;;  %v583_v4 = vld [vmem:[%s495_s18] sm:$0xf]  ;;  %v837_v34 = vlaneseq }
 0x107   : > { %2105 = vsyncadd (%p2775_p3), [#allocation16], 4294967280  ;;  %1598 = vmatprep.subr.bf16.mxu1 %v2136_v0  ;;  %1590 = vmatprep.subr.bf16.mxu0 %v2136_v0  ;;  %v1789_v2 = vld [vmem:[#allocation9] sm:$0xff]   ;;  %vm608_vm1 = vcmask 261120   ;;  %v1791_v5 = vld [vmem:[#allocation9 + $0x8] sm:$0xff]   ;;  %vm789_vm2 = vcmask 64512  }
 0x108   : > { %1602 = vmatprep.mubr.msk.bf16.mxu1 %vm2137_vm0, %v2136_v0  ;;  %1594 = vmatprep.mubr.msk.bf16.mxu0 %vm2137_vm0, %v2136_v0  ;;  %v582_v6 = vld [vmem:[%s486_s16] sm:$0xf]  ;;  %v1538_v7 = vld [vmem:[#allocation12] ss:$0 sm:$0xff]  ;;  %v1534_v8 = vld [vmem:[#allocation11] ss:$0 sm:$0xff] }
 0x109   : > { %1599 = vmatpush3.bf16.msra.mxu1 %v1788_v1  ;;  %1591 = vmatpush3.bf16.msra.mxu0 %v1789_v2  ;;  %s2138_s25 = smov 112   ;;  %s2139_s3 = smov 120   ;;  %v1792_v22 = vld [vmem:[#allocation14] sm:$0xff]   ;;  %v1793_v23 = vld [vmem:[#allocation14 + $0x8] sm:$0xff]   ;;  %v838_v36 = vshrl.u32 %v837_v34, 7  ;;  %v2141_v38 = vmov 0  }
 0x10a   : > { %1600 = vmatprep.subr.bf16.mxu1 %v2136_v0  ;;  %1592 = vmatprep.subr.bf16.mxu0 %v2136_v0  ;;  %s2140_s12 = smov 104   ;;  %v584_v24 = vld [vmem:[%s504_s4] sm:$0xf]  ;;  %p578_p11 = scmp.lt.s32.totalorder %s2232_s27, 1  ;;  %v1542_v47 = vld [vmem:[#allocation15] ss:$0 sm:$0xff] }
 0x10b   : > { %s2776_s10 = sld [smem:[#allocation31_spill]]  ;;  %v839_v37 = vsub.s32 0, %v838_v36  ;;  %vm858_vm5 = vcmask 1043456   ;;  %s2142_s13 = smov 8   ;;  %vm1021_vm6 = vcmask 130112   ;;  %vm1138_vm7 = vcmask 195712  }
 0x10c   : > { %s579_s15 = scalar_select %p578_p11, %s2232_s27, 1  ;;  %vm1255_vm8 = vcmask 261312  }
 0x10d   : > { %1601 = vmatpush3.bf16.msra.mxu1 %v1790_v3  ;;  %1593 = vmatpush3.bf16.msra.mxu0 %v1791_v5  ;;  %s2777_s26 = sld [smem:[#allocation34_spill]]  ;;  %s2143_s17 = smov 16  }
 0x10e   : > { %1614 = vmatprep.subr.bf16.mxu1 %v2136_v0  ;;  %1606 = vmatprep.subr.bf16.mxu0 %v2136_v0  ;;  %s2144_s18 = smov 24   ;;  %s1533_s4 = sshll.u32 %s2513_s14, 3 }
 0x10f   : > { %s2778_s21 = sld [smem:[#allocation35_spill]]  ;;  %s2779_s1 = sld [smem:[#allocation28_spill]] }
 0x110   : > { %1603 = vmatmul.mubr.msk.bf16.vlgmr.msra.gmra.mrb[0].mxu1 %vm608_vm1, %v583_v4  ;;  %1595 = vmatmul.mubr.msk.bf16.vlgmr.msra.gmra.mrb[0].mxu0 %vm608_vm1, %v582_v6  ;;  %s2780_s19 = sld [smem:[#allocation36_spill]] }
 0x111   : > { %1616 = vmatprep.mubr.msk.bf16.mxu1 %vm2137_vm0, %v2136_v0  ;;  %1610 = vmatprep.mubr.msk.bf16.mxu0 %vm2137_vm0, %v2136_v0  ;;  %s580_s7 = scalar_lea.vmem %s2776_s10, %s579_s15 }
 0x112   : > { %1607 = vmatpush3.bf16.msra.mxu0 %v1792_v22  ;;  %v787_v35 = vld [vmem:[%s580_s7] sm:$0x1] }
 0x113   : > { %1608 = vmatprep.subr.bf16.mxu0 %v2136_v0  ;;  %vm788_vm3 = vcmp.eq.f32.partialorder %v787_v35, 0.0 }
 0x114   : > { %v836_v39 = vsel %vm788_vm3, 1, %v2141_v38 }
 0x115   : > { %v840_v40 = vrot.slane %v836_v39, %v839_v37  ;;  %p2781_p8 = scmp.ne.s32.totalorder %s2779_s1, 0 }
 0x116   : > { %1609 = vmatpush3.bf16.msra.mxu0 %v1793_v23 }
 0x117   : > { %1620 = vmatprep.subr.bf16.mxu0 %v2136_v0  ;;  %vm841_vm4 = vcmp.eq.s32.totalorder %v840_v40, 1 }
 0x119   : > { %1611 = vmatmul.mubr.msk.bf16.vlgmr.msra.gmra.mrb[4].mxu0 %vm608_vm1, %v584_v24 }
 0x11a   : > { %1622 = vmatprep.mubr.msk.bf16.mxu0 %vm2137_vm0, %v2136_v0 }
 0x1e3   : > { %v712_v9 = vpop.f32.mrb[0].mxu1  ;;  %v646_v12 = vpop.f32.mrb[0].mxu0 }
 0x1e4   : > { %v713_v10 = vadd.f32 %v1538_v7, %v712_v9  ;;  %v1604_v11 = vpop.f32.mrb[1].mxu1  ;;  %v647_v14 = vadd.f32 %v1534_v8, %v646_v12  ;;  %v1596_v15 = vpop.f32.mrb[1].mxu0 }
 0x1e5   : > { %v715_v13 = vpop.f32.mrb[2].mxu1  ;;  %v649_v18 = vpop.f32.mrb[2].mxu0 }
 0x1e6   : > { %v785_v16 = vpack.c.bf16 %v713_v10, %v713_v10  ;;  %v1605_v17 = vpop.f32.mrb[3].mxu1  ;;  %v1597_v19 = vpop.f32.mrb[3].mxu0  ;;  %v784_v20 = vpack.c.bf16 %v647_v14, %v647_v14 }
 0x1e8   : > { %1025 = vrot.lane.b32.xlu1 %v785_v16, %s2138_s25  ;;  %907 = vrot.lane.b32.xlu0 %v785_v16, %s2139_s3  ;;  %v794_v21 = vsel %vm789_vm2, %v785_v16, 0 }
 0x1e9   : > { %1615 = vmatpush3.bf16.xpose.msra.mxu1 %v794_v21 }
 0x1ea   : > { %1626 = vmatprep.subr.bf16.mxu1 %v2136_v0 }
 0x1ec   : > { %1023 = vrot.lane.b32.xlu1 %v784_v20, %s2138_s25  ;;  %904 = vrot.lane.b32.xlu0 %v784_v20, %s2139_s3  ;;  %v778_v48 = vpop.f32.mrb[4].mxu0 }
 0x1ed   : > { %v779_v49 = vadd.f32 %v1542_v47, %v778_v48  ;;  %v1612_v50 = vpop.f32.mrb[5].mxu0 }
 0x1ee   : > { %v781_v51 = vpop.f32.mrb[6].mxu0 }
 0x1ef   : > { %v786_v52 = vpack.c.bf16 %v779_v49, %v779_v49  ;;  %v1613_v53 = vpop.f32.mrb[7].mxu0 }
 0x1f0   : > { %1140 = vrot.lane.b32.xlu1 %v784_v20, %s2140_s12  ;;  %1142 = vrot.lane.b32.xlu0 %v785_v16, %s2140_s12 }
 0x1f1   : > { %1617 = vmatmul.mubr.msk.bf16.vlgmr.msra.gmra.mrb[4].mxu1 %vm789_vm2, %v784_v20  ;;  %v860_v54 = vsel %vm858_vm5, %v786_v52, 0 }
 0x1f2   : > { %1628 = vmatprep.mubr.msk.bf16.mxu1 %vm2137_vm0, %v2136_v0  ;;  %1621 = vmatpush3.bf16.msra.mxu0 %v860_v54 }
 0x1f3   : > { %1632 = vmatprep.subr.bf16.mxu0 %v2136_v0 }
 0x25a   : > { %v908_v25 = vpop.permute.xlu0 %907  ;;  %v1026_v27 = vpop.permute.xlu1 %1025 }
 0x25b   : > { %v913_v26 = vsel %vm789_vm2, %v908_v25, 0  ;;  %v1031_v29 = vsel %vm789_vm2, %v1026_v27, 0 }
 0x25c   : > { %1627 = vmatpush3.bf16.xpose.msra.mxu1 %v913_v26 }
 0x25d   : > { %1638 = vmatprep.subr.bf16.mxu1 %v2136_v0 }
 0x25e   : > { %v905_v28 = vpop.permute.xlu0 %904  ;;  %v1024_v31 = vpop.permute.xlu1 %1023 }
 0x262   : > { %v1143_v30 = vpop.permute.xlu0 %1142  ;;  %v1141_v33 = vpop.permute.xlu1 %1140 }
 0x263   : > { %1629 = vmatmul.mubr.msk.bf16.vlgmr.msra.gmra.mrb[8].mxu1 %vm789_vm2, %v905_v28  ;;  %v1148_v32 = vsel %vm789_vm2, %v1143_v30, 0 }
 0x264   : > { %1639 = vmatpush3.bf16.xpose.msra.mxu1 %v1031_v29  ;;  %1640 = vmatprep.mubr.msk.bf16.mxu1 %vm2137_vm0, %v2136_v0 }
 0x265   : > { %1650 = vmatprep.subr.bf16.mxu1 %v2136_v0 }
 0x26b   : > { %1641 = vmatmul.mubr.msk.bf16.vlgmr.msra.gmra.mrb[12].mxu1 %vm789_vm2, %v1024_v31 }
 0x26c   : > { %1651 = vmatpush3.bf16.xpose.msra.mxu1 %v1148_v32  ;;  %1652 = vmatprep.mubr.msk.bf16.mxu1 %vm2137_vm0, %v2136_v0 }
 0x26d   : > { %1662 = vmatprep.subr.bf16.mxu1 %v2136_v0 }
 0x273   : > { %1653 = vmatmul.mubr.msk.bf16.vlgmr.msra.gmra.mrb[16].mxu1 %vm789_vm2, %v1141_v33 }
 0x274   : > { %1666 = vmatprep.mubr.msk.bf16.mxu1 %vm2137_vm0, %v2136_v0 }
 0x2c4   : > { %v830_v41 = vpop.f32.mrb[4].mxu1 }
 0x2c5   : > { %v842_v42 = vsel %vm841_vm4, -1e+30, %v830_v41  ;;  %v1618_v43 = vpop.f32.mrb[5].mxu1 }
 0x2c6   : > { %v833_v44 = vpop.f32.mrb[6].mxu1  ;;  %v843_v45 = vsel %vm789_vm2, %v842_v42, -inf }
 0x2c7   : > { %844 = vmax.xlane.f32.xlu0 %v843_v45  ;;  %v1619_v46 = vpop.f32.mrb[7].mxu1 }
 0x336   : > { %v949_v55 = vpop.f32.mrb[8].mxu1 }
 0x337   : > { %v955_v56 = vsel %vm841_vm4, -1e+30, %v949_v55  ;;  %v1630_v57 = vpop.f32.mrb[9].mxu1 }
 0x338   : > { %v952_v58 = vpop.f32.mrb[10].mxu1  ;;  %v956_v59 = vsel %vm789_vm2, %v955_v56, -inf }
 0x339   : > { %957 = vmax.xlane.f32.xlu1 %v956_v59  ;;  %v1631_v60 = vpop.f32.mrb[11].mxu1 }
 0x33a   : > { %v1794_v60 = vld [vmem:[%s2777_s26] sm:$0xff]  }
 0x33b   : > { %1663 = vmatpush3.bf16.msra.mxu1 %v1794_v60 }
 0x33c   : > { %1664 = vmatprep.subr.bf16.mxu1 %v2136_v0 }
 0x33e   : > { %v1067_v61 = vpop.f32.mrb[12].mxu1 }
 0x33f   : > { %v1073_v62 = vsel %vm841_vm4, -1e+30, %v1067_v61  ;;  %v1642_v63 = vpop.f32.mrb[13].mxu1  ;;  %v1795_v61 = vld [vmem:[%s2777_s26 + $0x8] sm:$0xff]  }
 0x340   : > { %v1070_v1 = vpop.f32.mrb[14].mxu1  ;;  %v1074_v2 = vsel %vm789_vm2, %v1073_v62, -inf  ;;  %1665 = vmatpush3.bf16.msra.mxu1 %v1795_v61 }
 0x341   : > { %1075 = vmax.xlane.f32.xlu0 %v1074_v2  ;;  %v1643_v3 = vpop.f32.mrb[15].mxu1 }
 0x346   : > { %v1184_v4 = vpop.f32.mrb[16].mxu1 }
 0x347   : > { %v1190_v5 = vsel %vm841_vm4, -1e+30, %v1184_v4  ;;  %v1654_v6 = vpop.f32.mrb[17].mxu1 }
 0x348   : > { %v1187_v7 = vpop.f32.mrb[18].mxu1  ;;  %v1191_v8 = vsel %vm789_vm2, %v1190_v5, -inf }
 0x349   : > { %1192 = vmax.xlane.f32.xlu0 %v1191_v8  ;;  %v1655_v9 = vpop.f32.mrb[19].mxu1 }
 0x354   : > { %v845_v10 = vpop.xlane.xlu0 %844 }
 0x355   : > { %v846_v11 = vsub.f32 %v842_v42, %v845_v10 }
 0x357   : > { %v847_v12 = vmul.f32 1.442695, %v846_v11  ;;  %v1554_v11 = vld [vmem:[%s2778_s21] ss:$0 sm:$0xff] }
 0x359   : > { %1796 = vpow2.f32 %v847_v12 }
 0x363   : > { %v1797_v13 = vpop.eup %1796 }
 0x364   : > { %v849_v14 = vsel %vm789_vm2, %v1797_v13, 0.0 }
 0x365   : > { %850 = vadd.xlane.f32.xlu1 %v849_v14 }
 0x376   : > { %969 = vrot.lane.b32.xlu1 %v786_v52, %s2139_s3  ;;  %s577_s3 = scalar_lea.vmem [#allocation17], %s1533_s4 }
 0x3c6   : > { %v958_v15 = vpop.xlane.xlu1 %957 }
 0x3c7   : > { %v959_v16 = vsub.f32 %v955_v56, %v958_v15 }
 0x3c9   : > { %v960_v17 = vmul.f32 1.442695, %v959_v16 }
 0x3cb   : > { %1798 = vpow2.f32 %v960_v17 }
 0x3ce   : > { %v1076_v18 = vpop.xlane.xlu0 %1075 }
 0x3cf   : > { %v1077_v19 = vsub.f32 %v1073_v62, %v1076_v18 }
 0x3d1   : > { %v1078_v20 = vmul.f32 1.442695, %v1077_v19 }
 0x3d3   : > { %1800 = vpow2.f32 %v1078_v20 }
 0x3d5   : > { %v1799_v21 = vpop.eup %1798 }
 0x3d6   : > { %v1193_v22 = vpop.xlane.xlu0 %1192  ;;  %v962_v23 = vsel %vm789_vm2, %v1799_v21, 0.0 }
 0x3d7   : > { %v1194_v24 = vsub.f32 %v1190_v5, %v1193_v22  ;;  %963 = vadd.xlane.f32.xlu0 %v962_v23 }
 0x3d9   : > { %v1195_v25 = vmul.f32 1.442695, %v1194_v24 }
 0x3db   : > { %1802 = vpow2.f32 %v1195_v25 }
 0x3dd   : > { %v1801_v26 = vpop.eup %1800 }
 0x3de   : > { %v1080_v27 = vsel %vm789_vm2, %v1801_v26, 0.0 }
 0x3df   : > { %1081 = vadd.xlane.f32.xlu1 %v1080_v27 }
 0x3e5   : > { %v1803_v28 = vpop.eup %1802 }
 0x3e6   : > { %v1197_v29 = vsel %vm789_vm2, %v1803_v28, 0.0 }
 0x3e7   : > { %1198 = vadd.xlane.f32.xlu0 %v1197_v29 }
 0x3f0   : > { %1203 = vrot.lane.b32.xlu1 %v786_v52, %s2140_s12  ;;  %s1340_s12 = sshll.u32 %s577_s3, 4  ;;  %s2656_s12 = int_to_ptr.vmem [resolvable:$true] %s1340_s12 }
 0x3f1   : > { %s2042_s7 = scalar_lea.vmem %s2656_s12, 128 }
 0x3f2   : > { %v851_v30 = vpop.xlane.xlu1 %850  ;;  %p2043_p6 = scmp.ne.s32.totalorder %s2656_s12, %s2042_s7 }
 0x3f3   : > { %1804 = vrcp.f32 %v851_v30 }
 0x3f4   : > { %p2044_p5 = pnand %p2043_p6, %p2781_p8 }
 0x3f6   : > { %v970_v32 = vpop.permute.xlu1 %969  ;;  %p2045_p2 = pneg %p2044_p5 }
 0x3f7   : > { %v975_v35 = vsel %vm858_vm5, %v970_v32, 0 }
 0x3fd   : > { %v1805_v31 = vpop.eup %1804  ;;  %1086 = vrot.lane.b32.xlu0 %v786_v52, %s2138_s25  ;;  %s1559_s25 = sshll.u32 %s2232_s27, 7  ;;  %s1327_s27 = scalar_lea.sflag [#allocation5], %s2513_s14 }
 0x3fe   : > { %v853_v33 = vmul.f32 %v1805_v31, %v1797_v13  ;;  %s2654_s10 = scalar_lea.hbm %s2780_s19, %s1559_s25 }
 0x400   : > { %v854_v34 = vpack.c.bf16 %v853_v33, %v853_v33 }
 0x402   : > { %1623 = vmatmul.mubr.msk.bf16.vlgmr.msra.gmra.mrb[8].mxu0 %vm789_vm2, %v854_v34 }
 0x403   : > { %1633 = vmatpush3.bf16.msra.mxu0 %v975_v35  ;;  %1634 = vmatprep.mubr.msk.bf16.mxu0 %vm2137_vm0, %v2136_v0 }
 0x404   : > { %1644 = vmatprep.subr.bf16.mxu0 %v2136_v0 }
 0x464   : > { %v964_v36 = vpop.xlane.xlu0 %963 }
 0x465   : > { %1806 = vrcp.f32 %v964_v36 }
 0x46c   : > { %v1082_v37 = vpop.xlane.xlu1 %1081 }
 0x46d   : > { %1808 = vrcp.f32 %v1082_v37 }
 0x46f   : > { %v1807_v38 = vpop.eup %1806 }
 0x470   : > { %v966_v39 = vmul.f32 %v1807_v38, %v1799_v21  ;;  %v1204_v46 = vpop.permute.xlu1 %1203 }
 0x471   : > { %v1209_v48 = vsel %vm858_vm5, %v1204_v46, 0 }
 0x472   : > { %v967_v40 = vpack.c.bf16 %v966_v39, %v966_v39 }
 0x474   : > { %v1199_v41 = vpop.xlane.xlu0 %1198  ;;  %1635 = vmatmul.mubr.msk.bf16.vlgmr.msra.gmra.mrb[12].mxu0 %vm789_vm2, %v967_v40 }
 0x475   : > { %1810 = vrcp.f32 %v1199_v41  ;;  %1646 = vmatprep.mubr.msk.bf16.mxu0 %vm2137_vm0, %v2136_v0 }
 0x477   : > { %v1809_v42 = vpop.eup %1808 }
 0x478   : > { %v1084_v43 = vmul.f32 %v1809_v42, %v1801_v26  ;;  %v1087_v44 = vpop.permute.xlu0 %1086 }
 0x479   : > { %v1092_v45 = vsel %vm858_vm5, %v1087_v44, 0 }
 0x47a   : > { %1645 = vmatpush3.bf16.msra.mxu0 %v1092_v45  ;;  %v1085_v47 = vpack.c.bf16 %v1084_v43, %v1084_v43 }
 0x47b   : > { %1656 = vmatprep.subr.bf16.mxu0 %v2136_v0 }
 0x47d   : > { %1647 = vmatmul.mubr.msk.bf16.vlgmr.msra.gmra.mrb[16].mxu0 %vm789_vm2, %v1085_v47 }
 0x47e   : > { %1657 = vmatpush3.bf16.msra.mxu0 %v1209_v48  ;;  %1658 = vmatprep.mubr.msk.bf16.mxu0 %vm2137_vm0, %v2136_v0 }
 0x47f   : > { %v1811_v49 = vpop.eup %1810 }
 0x480   : > { %v1201_v50 = vmul.f32 %v1811_v49, %v1803_v28 }
 0x482   : > { %v1202_v51 = vpack.c.bf16 %v1201_v50, %v1201_v50 }
 0x485   : > { %1659 = vmatmul.mubr.msk.bf16.vlgmr.msra.gmra.mrb[20].mxu0 %vm789_vm2, %v1202_v51 }
 0x4d5   : > { %v896_v52 = vpop.f32.mrb[8].mxu0 }
 0x4d6   : > { %902 = vst.msk [vmem:[#allocation2] sm:$0xff] %vm789_vm2, %v896_v52  ;;  %v1624_v53 = vpop.f32.mrb[9].mxu0 }
 0x4d7   : > { %v899_v54 = vpop.f32.mrb[10].mxu0 }
 0x4d8   : > { %v1625_v55 = vpop.f32.mrb[11].mxu0 }
 0x547   : > { %v1011_v56 = vpop.f32.mrb[12].mxu0 }
 0x548   : > { %1018 = vrot.lane.b32.xlu1 %v1011_v56, %s2142_s13  ;;  %v1636_v57 = vpop.f32.mrb[13].mxu0  ;;  %s2145_s13 = smov [#allocation17]  }
 0x549   : > { %v1014_v58 = vpop.f32.mrb[14].mxu0  ;;  %s2046_s20 = sshll.u32 %s2145_s13, 4  ;;  %s2047_s20 = int_to_ptr.vmem [resolvable:$false] %s2046_s20 }
 0x54a   : > { %v1637_v59 = vpop.f32.mrb[15].mxu0  ;;  %s2048_s11 = scalar_lea.vmem %s2047_s20, 256  ;;  %p2049_p4 = scmp.lt.s32.totalorder %s2656_s12, %s2047_s20 }
 0x54b   : > { %p2050_p10 = scmp.lt.s32.totalorder %s2048_s11, %s2042_s7 }
 0x54d   : > { %p2051_p1 = por %p2050_p10, %p2049_p4 }
 0x54f   : > { %p2052_p13 = pnand %p2051_p1, %p2045_p2 }
 0x550   : > { %v1128_v62 = vpop.f32.mrb[16].mxu0 }
 0x551   : > { %1135 = vrot.lane.b32.xlu0 %v1128_v62, %s2143_s17  ;;  %v1648_v63 = vpop.f32.mrb[17].mxu0 }
 0x552   : > { %v1131_v1 = vpop.f32.mrb[18].mxu0 }
 0x553   : > { %v1649_v2 = vpop.f32.mrb[19].mxu0 }
 0x558   : > { %v1245_v3 = vpop.f32.mrb[20].mxu0 }
 0x559   : > { %1252 = vrot.lane.b32.xlu1 %v1245_v3, %s2144_s18  ;;  %v1660_v4 = vpop.f32.mrb[21].mxu0 }
 0x55a   : > { %v1248_v5 = vpop.f32.mrb[22].mxu0 }
 0x55b   : > { %v1661_v6 = vpop.f32.mrb[23].mxu0 }
 0x5ba   : > { %v1019_v7 = vpop.permute.xlu1 %1018 }
 0x5bb   : > { %1022 = vst.msk [vmem:[#allocation2] sm:$0xff] %vm1021_vm6, %v1019_v7 }
 0x5c3   : > { %v1136_v0 = vpop.permute.xlu0 %1135 }
 0x5c4   : > { %1139 = vst.msk [vmem:[#allocation2] sm:$0xff] %vm1138_vm7, %v1136_v0 }
 0x5cb   : > { %v1253_v8 = vpop.permute.xlu1 %1252 }
 0x5cc   : > { %1256 = vst.msk [vmem:[#allocation2] sm:$0xff] %vm1255_vm8, %v1253_v8 }
 0x5d3   : > { %v1257_v9 = vld [vmem:[#allocation2] sm:$0xff] }
 0x5d4   : > { %v1258_v10 = vpack.c.bf16 %v1257_v9, %v1257_v9 }
 0x5d6   : > { %1667 = vmatmul.mubr.msk.bf16.vlgmr.msra.gmra.mrb[20].mxu1 %vm608_vm1, %v1258_v10 }
 0x6a9   : > { %v1319_v12 = vpop.f32.mrb[20].mxu1 }
 0x6aa   : > { %v1320_v13 = vadd.f32 %v1554_v11, %v1319_v12  ;;  %v1668_v14 = vpop.f32.mrb[21].mxu1 }
 0x6ab   : > { %v1322_v15 = vpop.f32.mrb[22].mxu1 }
 0x6ac   : > { %v1669_v16 = vpop.f32.mrb[23].mxu1  ;;  %1325 = vst.msk [vmem:[%s577_s3] sm:$0xff] %vm608_vm1, %v1320_v13 }
 0x6ad   : > { %2055 = shalt.err (!%p2052_p13)
}
 0x6ae   : > { %s2056_s14 = scalar_lea.hbm %s2654_s10, 128  ;;  %s2060_s17 = scalar_lea.hbm %s2780_s19, 256 }
 0x6af   : > { %p2057_p12 = scmp.ne.s32.totalorder %s2654_s10, %s2056_s14  ;;  %p2061_p9 = scmp.lt.u32.totalorder %s2654_s10, %s2780_s19 }
 0x6b0   : > { %p2062_p3 = scmp.lt.u32.totalorder %s2060_s17, %s2056_s14  ;;  %p2064_p6 = scmp.lt.u32.totalorder %s2056_s14, %s2654_s10 }
 0x6b1   : > { %p2058_p0 = pnand %p2057_p12, %p2781_p8 }
 0x6b2   : > { %p2063_p11 = por %p2062_p3, %p2061_p9 }
 0x6b3   : > { %p2059_p7 = pneg %p2058_p0 }
 0x6b4   : > { %p2065_p5 = por %p2064_p6, %p2063_p11 }
 0x6b6   : > { %p2066_p2 = pnand %p2065_p5, %p2059_p7 }
 0x6b8   : > { %2069 = shalt.err (!%p2066_p2)
}
 0x6b9   : > { %1696 = dma.vmem_to_hbm [thread:$0]  (%p2781_p8), %s2656_s12, 128, %s2654_s10, %s1327_s27  }
 0x6ba PF: > { %s2782_s29 = sld [smem:[#allocation24_spill]]  ;;  %s2783_s30 = sld [smem:[#allocation29_spill]] }
 0x6bb   : > { %s2784_s21 = sld [smem:[#allocation25_spill]] }
 0x6c0   : > { %s1352_s25 = sand.u32 1, %s2782_s29   ;;  %p2785_p4 = scmp.ne.s32.totalorder %s2783_s30, 0 }
 0x6c1   : > { %p2786_p10 = scmp.ge.s32.totalorder %s2784_s21, 2  ;;  %s1353_s3 = scalar_lea.sflag [#allocation5], %s1352_s25 }
 0x6c3   : > { %p1725_p1 = pnand %p2786_p10, %p2785_p4 }
 0x6c5   : > { %2107 = dma.done.wait (!%p1725_p1), %s1353_s3, 128  }
 0x6c6   : > { %2109 = vsyncadd (!%p1725_p1), %s1353_s3, 4294967168  ;;  %s2787_s24 = sld [smem:[#allocation26_spill]]  ;;  %s2788_s15 = sld [smem:[#allocation27_spill]] }
 0x6c7   : > { %s2789_s21 = smov %s2116_s22  ;;  %s2790_s22 = smov %s2120_s23 }
 0x6cc   : > { %p31_p13 = scmp.ge.s32.totalorder %s2787_s24, 4   ;;  %s2791_s23 = smov %s2788_s15 }
 0x6ce   :  { %33 = sbr.rel (!%p31_p13) target bundleno = 18 (0x12), region = 160 }
 0x6d5   :  { %1358 = vsyncpa [#allocation4], 1 }
 0x6d6   :  { %1360 = vsyncpa [#allocation4 + $0x1], 1 }
 0x6d7   :  { %1361 = vsyncpa [#allocation7], 1 }
 0x6d8   :  { %1363 = vsyncpa [#allocation7 + $0x1], 1 }
 0x6d9   :  { %1364 = vsyncpa [#allocation10], 1 }
 0x6da   :  { %1365 = vsyncpa [#allocation13], 1 }
 0x6db   :  { %1366 = vsyncpa [#allocation16], 1 }
 0x6dc   :  { %1367 = vsyncpa [#allocation5], 1 }
 0x6dd   :  { %1369 = vsyncpa [#allocation5 + $0x1], 1 }

</bundles_post_ra>
